<compile_context>
chip_gen: v7x
topology: tpu7x:2x2x1
jax: 0.10.0
libtpu: 0.0.40
codegen_flags: <defaults>
</compile_context>

<pallas_src>
import jax
import jax.numpy as jnp
from jax.experimental import pallas as pl
from jax.experimental.pallas import tpu as pltpu


def _time_embedding_kernel(x_ref, w1_ref, b1_ref, w2_ref, b2_ref, o_ref):
    # x_ref:  (B, n_embd)  f32   (resident across the grid)
    # w1_ref: (n_embd, n_hid) bf16 (resident)
    # b1_ref: (1, n_hid)   f32   (resident)
    # w2_ref: (n_hid, tn)  bf16  (streamed column stripe, double-buffered)
    # b2_ref: (1, tn)      f32   (streamed with w2)
    # o_ref:  (B, tn)            (lane-dense output stripe)
    x = x_ref[...].astype(w1_ref.dtype)           # bf16 operands -> fast MXU path
    # First linear + SiLU in f32.  This is recomputed per output tile: it is a
    # (B x n_embd x n_hid) matmul, negligible next to streaming w2, and keeps
    # the grid axis trivially parallel (no cross-iteration state).
    h = jnp.dot(x, w1_ref[...], preferred_element_type=jnp.float32) + b1_ref[...]
    h = h * jax.nn.sigmoid(h)                     # SiLU: sigmoid on EUP, mul on VPU
    # Second linear: deliberate bf16 downcast of activations, f32 accumulation.
    y = (jnp.dot(h.astype(w2_ref.dtype), w2_ref[...],
                 preferred_element_type=jnp.float32)
         + b2_ref[...])
    o_ref[...] = y.astype(o_ref.dtype)


def time_embedding(x, w1, b1, w2, b2, *, tn=None):
    """x: (B, n_embd) f32; w1: (n_embd, 4n) bf16; b1: (1, 4n) f32;
       w2: (4n, 4n) bf16; b2: (1, 4n) f32.  Returns (B, 4n) in x.dtype."""
    B, n_embd = x.shape
    n_hid = w1.shape[1]  # 4 * n_embd
    assert w1.shape == (n_embd, n_hid)
    assert w2.shape == (n_hid, n_hid)
    assert b1.shape == (1, n_hid) and b2.shape == (1, n_hid)
    assert n_hid % 128 == 0, "output features must be a multiple of 128 lanes"

    # Output column-tile width: lane-dense (multiple of 128), big enough to
    # amortize per-step overhead, small enough to double-buffer comfortably.
    if tn is None:
        tn = next(c for c in (512, 384, 256, 128) if n_hid % c == 0)
    assert tn % 128 == 0 and n_hid % tn == 0

    # Pad batch to a multiple of 8 sublanes so stores are unmasked / dense.
    B_pad = ((B + 7) // 8) * 8
    x_p = jnp.pad(x, ((0, B_pad - B), (0, 0))) if B_pad != B else x

    out = pl.pallas_call(
        _time_embedding_kernel,
        out_shape=jax.ShapeDtypeStruct((B_pad, n_hid), x.dtype),
        grid=(n_hid // tn,),
        in_specs=[
            pl.BlockSpec((B_pad, n_embd), lambda j: (0, 0)),   # x: resident
            pl.BlockSpec((n_embd, n_hid), lambda j: (0, 0)),   # w1: resident
            pl.BlockSpec((1, n_hid), lambda j: (0, 0)),        # b1: resident
            pl.BlockSpec((n_hid, tn), lambda j: (0, j)),       # w2: streamed stripes
            pl.BlockSpec((1, tn), lambda j: (0, j)),           # b2: streamed stripes
        ],
        out_specs=pl.BlockSpec((B_pad, tn), lambda j: (0, j)),
        compiler_params=pltpu.CompilerParams(
            # Independent output stripes -> megacore shards the w2 stream on v7x.
            dimension_semantics=("parallel",),
        ),
    )(x_p, w1, b1, w2, b2)

    return out[:B] if B_pad != B else out


def _ref_time_embedding(x, w1, b1, w2, b2):
    # Same numerics as the kernel: bf16 operands, f32 accumulation, f32 SiLU.
    h = jnp.dot(x.astype(w1.dtype), w1, preferred_element_type=jnp.float32) + b1
    h = h * jax.nn.sigmoid(h)
    return jnp.dot(h.astype(w2.dtype), w2, preferred_element_type=jnp.float32) + b2


if __name__ == "__main__":
    # Small synthetic sizes (SD uses n_embd=320 -> n_hid=1280).  n_embd=64 gives
    # n_hid=256, i.e. two 128-wide output tiles, so the grid path is exercised.
    n_embd = 64
    n_hid = 4 * n_embd
    batch = 2

    key = jax.random.PRNGKey(0)
    kx, k1, kb1, k2, kb2 = jax.random.split(key, 5)

    x = jax.random.normal(kx, (batch, n_embd), dtype=jnp.float32)
    # Deterministic parameter init (synthetic; not loaded from a checkpoint).
    # Weights live in bf16 (streamed dtype); biases stay f32.
    w1 = (jax.random.normal(k1, (n_embd, n_hid), dtype=jnp.float32) * 0.02
          ).astype(jnp.bfloat16)
    b1 = jax.random.normal(kb1, (1, n_hid), dtype=jnp.float32) * 0.02
    w2 = (jax.random.normal(k2, (n_hid, n_hid), dtype=jnp.float32) * 0.02
          ).astype(jnp.bfloat16)
    b2 = jax.random.normal(kb2, (1, n_hid), dtype=jnp.float32) * 0.02

    out = jax.block_until_ready(time_embedding(x, w1, b1, w2, b2, tn=128))

    ref = _ref_time_embedding(x, w1, b1, w2, b2)
    assert out.shape == (batch, n_hid), out.shape
    assert jnp.allclose(out, ref, atol=2e-3, rtol=2e-3), (
        float(jnp.max(jnp.abs(out - ref))))

    print("KERNEL_OK")
</pallas_src>

<mosaic_0001>
module attributes {stable_mosaic.version = 11 : i64} {
  func.func @_time_embedding_kernel(%arg0: i32, %arg1: memref<8x64xf32, #tpu.memory_space<vmem>>, %arg2: memref<64x256xbf16, #tpu.memory_space<vmem>>, %arg3: memref<1x256xf32, #tpu.memory_space<vmem>>, %arg4: memref<256x128xbf16, #tpu.memory_space<vmem>>, %arg5: memref<1x128xf32, #tpu.memory_space<vmem>>, %arg6: memref<8x128xf32, #tpu.memory_space<vmem>>) attributes {dimension_semantics = [#tpu.dimension_semantics<parallel>], iteration_bounds = array<i64: 2>, scalar_prefetch = 0 : i64, scratch_operands = 0 : i64, tpu.core_type = #tpu.core_type<tc>, window_params = [{pipeline_mode = #tpu.pipeline_mode<synchronous>, transform_indices = @transform_0, window_bounds = array<i64: 8, 64>}, {pipeline_mode = #tpu.pipeline_mode<synchronous>, transform_indices = @transform_1, window_bounds = array<i64: 64, 256>}, {pipeline_mode = #tpu.pipeline_mode<synchronous>, transform_indices = @transform_2, window_bounds = array<i64: 1, 256>}, {transform_indices = @transform_3, window_bounds = array<i64: 256, 128>}, {transform_indices = @transform_4, window_bounds = array<i64: 1, 128>}, {transform_indices = @transform_5, window_bounds = array<i64: 8, 128>}]} {
    %c0 = arith.constant 0 : index
    %c0_0 = arith.constant 0 : index
    %0 = vector.load %arg1[%c0, %c0_0] : memref<8x64xf32, #tpu.memory_space<vmem>>, vector<8x64xf32>
    %1 = arith.truncf %0 : vector<8x64xf32> to vector<8x64xbf16>
    %c0_1 = arith.constant 0 : index
    %c0_2 = arith.constant 0 : index
    %2 = vector.load %arg2[%c0_1, %c0_2] : memref<64x256xbf16, #tpu.memory_space<vmem>>, vector<64x256xbf16>
    %cst = arith.constant dense<0.000000e+00> : vector<8x256xf32>
    %3 = tpu.matmul %1, %2, %cst {dimension_numbers = #tpu.dot_dimension_numbers<[1], [0], [0], [1], [0, 0, 1, 1], [], []>} : vector<8x64xbf16>, vector<64x256xbf16>, vector<8x256xf32> -> vector<8x256xf32>
    %c0_3 = arith.constant 0 : index
    %c0_4 = arith.constant 0 : index
    %4 = vector.load %arg3[%c0_3, %c0_4] : memref<1x256xf32, #tpu.memory_space<vmem>>, vector<1x256xf32>
    %5 = vector.broadcast %4 : vector<1x256xf32> to vector<8x256xf32>
    %6 = arith.addf %3, %5 : vector<8x256xf32>
    %7 = arith.negf %6 : vector<8x256xf32>
    %8 = math.exp %7 : vector<8x256xf32>
    %cst_5 = arith.constant 1.000000e+00 : f32
    %9 = vector.broadcast %cst_5 : f32 to vector<8x256xf32>
    %10 = arith.addf %9, %8 : vector<8x256xf32>
    %11 = arith.divf %9, %10 : vector<8x256xf32>
    %12 = arith.mulf %6, %11 : vector<8x256xf32>
    %13 = arith.truncf %12 : vector<8x256xf32> to vector<8x256xbf16>
    %c0_6 = arith.constant 0 : index
    %c0_7 = arith.constant 0 : index
    %14 = vector.load %arg4[%c0_6, %c0_7] : memref<256x128xbf16, #tpu.memory_space<vmem>>, vector<256x128xbf16>
    %cst_8 = arith.constant dense<0.000000e+00> : vector<8x128xf32>
    %15 = tpu.matmul %13, %14, %cst_8 {dimension_numbers = #tpu.dot_dimension_numbers<[1], [0], [0], [1], [0, 0, 1, 1], [], []>} : vector<8x256xbf16>, vector<256x128xbf16>, vector<8x128xf32> -> vector<8x128xf32>
    %c0_9 = arith.constant 0 : index
    %c0_10 = arith.constant 0 : index
    %16 = vector.load %arg5[%c0_9, %c0_10] : memref<1x128xf32, #tpu.memory_space<vmem>>, vector<1x128xf32>
    %17 = vector.broadcast %16 : vector<1x128xf32> to vector<8x128xf32>
    %18 = arith.addf %15, %17 : vector<8x128xf32>
    %c0_11 = arith.constant 0 : index
    %c0_12 = arith.constant 0 : index
    %19 = vector.load %arg6[%c0_11, %c0_12] : memref<8x128xf32, #tpu.memory_space<vmem>>, vector<8x128xf32>
    tpu.vector_store %arg6[%c0_11, %c0_12], %18 {strides = array<i32>} : memref<8x128xf32, #tpu.memory_space<vmem>>, vector<8x128xf32>,
    return
  }
  func.func @transform_0(%arg0: i32) -> (i32, i32) {
    %c0_i32 = arith.constant 0 : i32
    %c0_i32_0 = arith.constant 0 : i32
    %c0_i32_1 = arith.constant 0 : i32
    return %c0_i32, %c0_i32_0 : i32, i32
  }
  func.func @transform_1(%arg0: i32) -> (i32, i32) {
    %c0_i32 = arith.constant 0 : i32
    %c0_i32_0 = arith.constant 0 : i32
    %c0_i32_1 = arith.constant 0 : i32
    return %c0_i32, %c0_i32_0 : i32, i32
  }
  func.func @transform_2(%arg0: i32) -> (i32, i32) {
    %c0_i32 = arith.constant 0 : i32
    %c0_i32_0 = arith.constant 0 : i32
    %c0_i32_1 = arith.constant 0 : i32
    return %c0_i32, %c0_i32_0 : i32, i32
  }
  func.func @transform_3(%arg0: i32) -> (i32, i32) {
    %c0_i32 = arith.constant 0 : i32
    %c0_i32_0 = arith.constant 0 : i32
    return %c0_i32, %arg0 : i32, i32
  }
  func.func @transform_4(%arg0: i32) -> (i32, i32) {
    %c0_i32 = arith.constant 0 : i32
    %c0_i32_0 = arith.constant 0 : i32
    return %c0_i32, %arg0 : i32, i32
  }
  func.func @transform_5(%arg0: i32) -> (i32, i32) {
    %c0_i32 = arith.constant 0 : i32
    %c0_i32_0 = arith.constant 0 : i32
    return %c0_i32, %arg0 : i32, i32
  }
}

</mosaic_0001>

<bundles_post_ra>
// kernel: tpu_custom_call.1
= control target key start
LH: loop header
LB: loop body
LE: loop exit
PB: predicated region body
PF: predicated region fallthrough
CT: control target
= control target key end

     0   :  { %s1332_s0 = inlined_call_operand.hbm [shape: f32[8,64], index: 0, kind: input, shape index: {}]   ;;  %s1333_s1 = inlined_call_operand.hbm [shape: bf16[64,256], index: 1, kind: input, shape index: {}]   ;;  %s1334_s2 = inlined_call_operand.vmem [shape: f32[1,256], index: 2, kind: input, shape index: {}]   ;;  %s1335_s3 = inlined_call_operand.hbm [shape: bf16[256,256], index: 3, kind: input, shape index: {}]   ;;  %s1336_s4 = inlined_call_operand.vmem [shape: f32[1,256], index: 4, kind: input, shape index: {}]   ;;  %s1337_s5 = inlined_call_operand.hbm [shape: f32[8,256], index: 5, kind: output, shape index: {}]  }
   0x1   :  { %1343 = sst [smem:[#allocation14_spill]] %s1332_s0 }
   0x2   :  { %10 = vsyncpa [#allocation3], 0 }
   0x3   :  { %11 = vsyncpa [#allocation6], 0 }
   0x4   :  { %12 = vsyncpa [#allocation4], 0 }
   0x5   :  { %14 = vsyncpa [#allocation4 + $0x1], 0  ;;  %s1068_s18 = smov 0   ;;  %s1070_s19 = smov 0  }
   0x6   :  { %s1072_s20 = smov 0   ;;  %s1074_s21 = smov 0  }
   0x7 LB: > { %s1089_s22 = sadd.s32 4294967295, %s1027_s21   ;;  %s693_s23 = sadd.s32 4294967294, %s1027_s21   ;;  %s1027_s21 = sphi %s1074_s21, %s1368_s21   ;;  %s1023_s20 = sphi %s1072_s20, %s1367_s20   ;;  %s1019_s19 = sphi %s1070_s19, %s1366_s19   ;;  %s1015_s18 = sphi %s1068_s18, %s1365_s18  }
   0x8   : > { %s1093_s24 = sadd.s32 1, %s1027_s21   ;;  %s90_s25 = sadd.s32 1, %s1023_s20 }
   0x9   : > { %s87_s26 = ssub.s32 %s1027_s21, %s1093_s24  ;;  %p97_p0 = scmp.ne.s32.totalorder %s1023_s20, %s1019_s19 }
   0xa   : > { %p88_p1 = scmp.eq.s32.totalorder %s87_s26, 0  ;;  %p98_p2 = scmp.eq.s32.totalorder %s1027_s21, 0 }
   0xb   : > { %p103_p3 = scmp.ne.s32.totalorder %s1019_s19, %s1015_s18  ;;  %p1338_p4 = scmp.eq.s32.totalorder %s1089_s22, 0 }
   0xc   : > { %s1105_s27 = scalar_select %p88_p1, %s1023_s20, %s90_s25  }
   0xd   : > { %p1107_p5 = por %p98_p2, %p97_p0  ;;  %p1113_p6 = por %p1338_p4, %p103_p3 }
   0xe   : > { %1344 = sst [smem:[#allocation13_spill]] %s1105_s27  ;;  %p153_p7 = scmp.eq.s32.totalorder %s1089_s22, 1 }
   0xf   : > { %s1346_s29 = scalar_select %p1113_p6, 1, 0 }
  0x10   : > { %p159_p8 = scmp.eq.s32.totalorder %s693_s23, 1  ;;  %p694_p9 = scmp.ge.s32.totalorder %s1027_s21, 1 }
  0x11   : > { %p166_p10 = scmp.lt.s32.totalorder %s1027_s21, 3  ;;  %p1120_p11 = por %p153_p7, %p97_p0 }
  0x12   : > { %p1124_p12 = por %p159_p8, %p103_p3  ;;  %s1029_s8 = smov [#allocation2]  }
  0x13   : > { %s1347_s30 = scalar_select %p1120_p11, 1, 0 }
  0x14   : > { %s1348_s6 = scalar_select %p1124_p12, 1, 0 }
  0x15   : > { %p1128_p13 = pnand %p694_p9, %p166_p10  ;;  %s179_s9 = sshll.u32 %s1029_s8, 4  ;;  %s180_s9 = int_to_ptr.vmem [resolvable:$true] %s179_s9 }
  0x16   : > { %p788_p4 = scmp.lt.s32.totalorder %s1027_s21, 2  ;;  %p1350_p0 = scmp.eq.s32.totalorder %s1089_s22, 0 }
  0x17   : > { %s1349_s7 = scalar_select %p1128_p13, 1, 0 }
  0x18   : > { %p771_p2 = pneg %p1128_p13  ;;  %p1144_p3 = pnand %p788_p4, %p1107_p5 }
  0x19   : > { %s1030_s12 = smov [#allocation5]   ;;  %s1353_s0 = sld [smem:[#allocation14_spill]] }
  0x1a   : > { %p1138_p7 = pnand %p771_p2, %p1350_p0  ;;  %s189_s13 = sshll.u32 %s1030_s12, 4  ;;  %s1148_s13 = int_to_ptr.vmem [resolvable:$true] %s189_s13 }
  0x1b   : > { %s1352_s11 = scalar_select %p1144_p3, 1, 0 }
  0x1c   : > { %p869_p9 = pneg %p1138_p7 }
  0x1f   : > { %s867_s16 = scalar_lea.hbm %s1353_s0, 128 }
  0x20   : > { %p868_p8 = scmp.ne.s32.totalorder %s1353_s0, %s867_s16  ;;  %p874_p10 = scmp.lt.u32.totalorder %s867_s16, %s1353_s0 }
  0x22   : > { %p870_p4 = pnand %p869_p9, %p868_p8 }
  0x24   : > { %p871_p5 = pneg %p870_p4 }
  0x26   : > { %p876_p2 = pnand %p874_p10, %p871_p5 }
  0x28   : > { %879 = shalt.err (!%p876_p2)
}
  0x29   : > { %s880_s28 = scalar_lea.vmem %s180_s9, 128  ;;  %p888_p11 = scmp.lt.s32.totalorder %s180_s9, %s180_s9 }
  0x2a   : > { %p881_p0 = scmp.ne.s32.totalorder %s180_s9, %s880_s28  ;;  %p889_p6 = scmp.lt.s32.totalorder %s880_s28, %s880_s28 }
  0x2c   : > { %p883_p1 = pnand %p881_p0, %p869_p9  ;;  %p890_p13 = por %p889_p6, %p888_p11 }
  0x2e   : > { %p884_p12 = pneg %p883_p1 }
  0x30   : > { %p891_p3 = pnand %p890_p13, %p884_p12 }
  0x32   : > { %894 = shalt.err (!%p891_p3)
}
  0x33   : > { %774 = dma.hbm_to_vmem [thread:$0]  (!%p1138_p7), %s1353_s0, 128, %s180_s9, [#allocation3]  }
  0x34   : > { %s206_s14 = sand.u32 1, %s1027_s21   ;;  %s895_s17 = scalar_lea.hbm %s1333_s1, 1024 }
  0x35   : > { %p896_p1 = scmp.ne.s32.totalorder %s1333_s1, %s895_s17  ;;  %p902_p12 = scmp.lt.u32.totalorder %s895_s17, %s1333_s1 }
  0x37   : > { %p898_p6 = pnand %p896_p1, %p869_p9 }
  0x39   : > { %p899_p11 = pneg %p898_p6 }
  0x3b   : > { %p904_p13 = pnand %p902_p12, %p899_p11 }
  0x3d   : > { %907 = shalt.err (!%p904_p13)
}
  0x3e   : > { %s908_s9 = scalar_lea.vmem %s1148_s13, 1024  ;;  %p916_p5 = scmp.lt.s32.totalorder %s1148_s13, %s1148_s13 }
  0x3f   : > { %p909_p3 = scmp.ne.s32.totalorder %s1148_s13, %s908_s9  ;;  %p917_p10 = scmp.lt.s32.totalorder %s908_s9, %s908_s9 }
  0x41   : > { %p911_p8 = pnand %p909_p3, %p869_p9  ;;  %p918_p2 = por %p917_p10, %p916_p5 }
  0x43   : > { %p912_p4 = pneg %p911_p8 }
  0x45   : > { %p919_p0 = pnand %p918_p2, %p912_p4 }
  0x47   : > { %922 = shalt.err (!%p919_p0)
}
  0x48   : > { %s1031_s8 = smov 128   ;;  %s1032_s12 = smov 8  }
  0x49   : > { %777 = dma.hbm_to_vmem [thread:$0]  (!%p1138_p7), %s1333_s1, 1024, %s1148_s13, [#allocation6], %s1031_s8, %s1031_s8, %s1032_s12  }
  0x4a   : > { %s208_s17 = sand.u32 1, %s1023_s20   ;;  %s699_s25 = sshll.u32 %s1027_s21, 6 }
  0x4b   : > { %s698_s23 = sshll.u32 %s208_s17, 7  ;;  %s1205_s9 = scalar_lea.hbm %s1335_s3, %s699_s25 }
  0x4c   : > { %s210_s0 = scalar_lea.vmem [#allocation7], %s698_s23  ;;  %s1209_s27 = scalar_lea.sflag [#allocation3], %s206_s14 }
  0x4d   : > { %s216_s10 = sshll.u32 %s210_s0, 4  ;;  %s923_s15 = scalar_lea.hbm %s1205_s9, 2048  ;;  %s1207_s10 = int_to_ptr.vmem [resolvable:$true] %s216_s10 }
  0x4e   : > { %p924_p7 = scmp.ne.s32.totalorder %s1205_s9, %s923_s15  ;;  %p1354_p9 = scmp.ne.s32.totalorder %s1352_s11, 0 }
  0x4f   : > { %s928_s16 = scalar_lea.hbm %s1335_s3, 4096  ;;  %p929_p12 = scmp.lt.u32.totalorder %s1205_s9, %s1335_s3 }
  0x50   : > { %p925_p1 = pneg %p1354_p9  ;;  %p930_p13 = scmp.lt.u32.totalorder %s928_s16, %s923_s15 }
  0x51   : > { %p932_p8 = scmp.lt.u32.totalorder %s923_s15, %s1205_s9 }
  0x52   : > { %p926_p6 = pnand %p925_p1, %p924_p7  ;;  %p931_p3 = por %p930_p13, %p929_p12 }
  0x54   : > { %p927_p11 = pneg %p926_p6  ;;  %p933_p4 = por %p932_p8, %p931_p3 }
  0x56   : > { %p934_p5 = pnand %p933_p4, %p927_p11 }
  0x58   : > { %937 = shalt.err (!%p934_p5)
}
  0x59   : > { %s938_s0 = scalar_lea.vmem %s1207_s10, 2048  ;;  %s1033_s14 = smov [#allocation7]  }
  0x5a   : > { %p939_p10 = scmp.ne.s32.totalorder %s1207_s10, %s938_s0  ;;  %s943_s23 = sshll.u32 %s1033_s14, 4  ;;  %s944_s23 = int_to_ptr.vmem [resolvable:$false] %s943_s23 }
  0x5b   : > { %s945_s26 = scalar_lea.vmem %s944_s23, 4096  ;;  %p946_p7 = scmp.lt.s32.totalorder %s1207_s10, %s944_s23 }
  0x5c   : > { %p941_p2 = pnand %p939_p10, %p925_p1  ;;  %p947_p6 = scmp.lt.s32.totalorder %s945_s26, %s938_s0 }
  0x5e   : > { %p942_p0 = pneg %p941_p2  ;;  %p948_p12 = por %p947_p6, %p946_p7 }
  0x60   : > { %p949_p13 = pnand %p948_p12, %p942_p0 }
  0x62   : > { %952 = shalt.err (!%p949_p13)
}
  0x63   : > { %s1034_s28 = smov 64   ;;  %s1035_s15 = smov 4  }
  0x64   : > { %781 = dma.hbm_to_vmem [thread:$0]  (!%p1354_p9), %s1205_s9, 2048, %s1207_s10, %s1209_s27, %s1031_s8, %s1034_s28, %s1035_s15  }
  0x65   : > { %p1355_p1 = scmp.ne.s32.totalorder %s1349_s7, 0 }
  0x66   : > { %p1356_p11 = scmp.eq.s32.totalorder (!%p1355_p1), %s1089_s22, 0 }
  0x67   : > { %234 = sbr.rel (%p1355_p1) target bundleno = 614 (0x266), region = 40 }
  0x6e   : > { %998 = dma.done.wait (%p1356_p11), [#allocation3], 128   ;;  %p1357_p3 = pmov %p1356_p11 }
  0x70   : > { %1000 = vsyncadd (%p1357_p3), [#allocation3], 4294967168  ;;  %p1358_p8 = pmov %p1357_p3 }
  0x71   : > { %p1359_p4 = pmov %p1357_p3 }
  0x72   : > { %1002 = dma.done.wait (%p1358_p8), [#allocation6], 1024  }
  0x73   : > { %1004 = vsyncadd (%p1359_p4), [#allocation6], 4294966272  ;;  %s244_s11 = sand.u32 1, %s1089_s22   ;;  %s1250_s27 = sand.u32 1, %s1019_s19  }
  0x74   : > { %s703_s7 = sshll.u32 %s1250_s27, 7  ;;  %s245_s8 = scalar_lea.sflag [#allocation3], %s244_s11 }
  0x75   : > { %s1253_s9 = scalar_lea.vmem [#allocation7], %s703_s7  ;;  %p1360_p9 = scmp.ne.s32.totalorder %s1346_s29, 0 }
  0x77   : > { %1006 = dma.done.wait (%p1360_p9), %s245_s8, 2048  }
  0x78   : > { %1008 = vsyncadd (%p1360_p9), %s245_s8, 4294965248  ;;  %v1036_v0 = vmov 0   ;;  %v831_v1 = vld [vmem:[#allocation5 + $0x4] ss:$8 sps:$4 sm:$0xff]   ;;  %v833_v2 = vld [vmem:[#allocation5] ss:$8 sps:$4 sm:$0xff]   ;;  %v294_v27 = vlaneseq }
  0x79   : > { %380 = vmatprep.mubr.bf16.mxu0 %v1036_v0  ;;  %348 = vmatprep.subr.bf16.mxu0 %v831_v1  ;;  %v834_v3 = vld [vmem:[#allocation5 + $0x14] ss:$8 sps:$4 sm:$0xff]   ;;  %v836_v4 = vld [vmem:[#allocation5 + $0x10] ss:$8 sps:$4 sm:$0xff]   ;;  %v837_v5 = vld [vmem:[#allocation5 + $0x24] ss:$8 sps:$4 sm:$0xff]  }
  0x7a   : > { %349 = vmatpush1.bf16.msra.mxu0 %v833_v2  ;;  %v839_v6 = vld [vmem:[#allocation5 + $0x20] ss:$8 sps:$4 sm:$0xff]   ;;  %v840_v7 = vld [vmem:[#allocation5 + $0x34] ss:$8 sps:$4 sm:$0xff]   ;;  %vm344_vm0 = vcmask 523264   ;;  %v295_v28 = vshrl.u32 %v294_v27, 7 }
  0x7b   : > { %350 = vmatprep.subr.bf16.mxu0 %v834_v3  ;;  %v842_v8 = vld [vmem:[#allocation5 + $0x30] ss:$8 sps:$4 sm:$0xff]   ;;  %v843_v11 = vld [vmem:[%s1253_s9 + $0x40] sm:$0xff]   ;;  %v845_v13 = vld [vmem:[%s1253_s9 + $0x48] sm:$0xff]   ;;  %p278_p5 = scmp.lt.s32.totalorder %s1089_s22, 1  ;;  %s704_s12 = sshll.u32 %s1250_s27, 3 }
  0x7c   : > { %v282_v9 = vld [vmem:[#allocation2] sm:$0xff]  ;;  %v844_v12 = vld [vmem:[%s1253_s9] sm:$0xff]   ;;  %737 = vmatprep.subr.bf16.mxu1 %v843_v11  ;;  %v846_v14 = vld [vmem:[%s1253_s9 + $0x8] sm:$0xff]   ;;  %v296_v29 = vsub.s32 0, %v295_v28  ;;  %v300_v31 = vsub.s32 1, %v295_v28  ;;  %s734_s0 = sshll.u32 %s1089_s22, 7 }
  0x7d   : > { %v283_v10 = vpack.c.bf16 %v282_v9, %v282_v9  ;;  %738 = vmatpush3.bf16.msra.mxu1 %v844_v12  ;;  %v847_v15 = vld [vmem:[%s1253_s9 + $0x50] sm:$0xff]   ;;  %v849_v17 = vld [vmem:[%s1253_s9 + $0x58] sm:$0xff]   ;;  %v851_v19 = vld [vmem:[%s1253_s9 + $0x60] sm:$0xff]   ;;  %s279_s13 = scalar_select %p278_p5, %s1089_s22, 1 }
  0x7e   : > { %351 = vmatpush1.bf16.msra.mxu0 %v836_v4  ;;  %739 = vmatprep.subr.bf16.mxu1 %v845_v13  ;;  %v848_v16 = vld [vmem:[%s1253_s9 + $0x10] sm:$0xff]   ;;  %v850_v18 = vld [vmem:[%s1253_s9 + $0x18] sm:$0xff]   ;;  %v852_v20 = vld [vmem:[%s1253_s9 + $0x20] sm:$0xff]   ;;  %s277_s14 = scalar_lea.vmem [#allocation8], %s704_s12  ;;  %s1288_s15 = scalar_lea.hbm %s1337_s5, %s734_s0 }
  0x7f   : > { %352 = vmatprep.subr.bf16.mxu0 %v837_v5  ;;  %v853_v21 = vld [vmem:[%s1253_s9 + $0x68] sm:$0xff]   ;;  %v855_v23 = vld [vmem:[%s1253_s9 + $0x70] sm:$0xff]   ;;  %v857_v25 = vld [vmem:[%s1253_s9 + $0x78] sm:$0xff]   ;;  %s280_s25 = scalar_lea.vmem %s1336_s4, %s279_s13  ;;  %s595_s23 = sshll.u32 %s277_s14, 4  ;;  %s1290_s23 = int_to_ptr.vmem [resolvable:$true] %s595_s23 }
  0x80   : > { %v854_v22 = vld [vmem:[%s1253_s9 + $0x28] sm:$0xff]   ;;  %v856_v24 = vld [vmem:[%s1253_s9 + $0x30] sm:$0xff]   ;;  %v858_v26 = vld [vmem:[%s1253_s9 + $0x38] sm:$0xff]   ;;  %s582_s11 = scalar_lea.sflag [#allocation4], %s1250_s27  ;;  %s953_s7 = scalar_lea.vmem %s1290_s23, 128 }
  0x81   : > { %740 = vmatpush3.bf16.msra.mxu1 %v846_v14  ;;  %v292_v30 = vld [vmem:[%s1334_s2] sm:$0x3]  ;;  %p954_p10 = scmp.ne.s32.totalorder %s1290_s23, %s953_s7  ;;  %p1361_p2 = scmp.ne.s32.totalorder %s1347_s30, 0 }
  0x82   : > { %353 = vmatpush1.bf16.msra.mxu0 %v839_v6  ;;  %741 = vmatprep.subr.bf16.mxu1 %v847_v15  ;;  %v297_v32 = vrot.slane %v292_v30, %v296_v29  ;;  %v301_v33 = vrot.slane %v292_v30, %v300_v31  ;;  %v716_v53 = vld [vmem:[%s280_s25] ss:$0 sm:$0xff]  ;;  %s1037_s22 = smov [#allocation8]  }
  0x83   : > { %354 = vmatprep.subr.bf16.mxu0 %v840_v7  ;;  %p955_p0 = pnand %p954_p10, %p1361_p2  ;;  %s957_s8 = sshll.u32 %s1037_s22, 4  ;;  %s958_s8 = int_to_ptr.vmem [resolvable:$false] %s957_s8 }
  0x84   : > { %s959_s9 = scalar_lea.vmem %s958_s8, 256  ;;  %p960_p6 = scmp.lt.s32.totalorder %s1290_s23, %s958_s8 }
  0x85   : > { %742 = vmatpush3.bf16.msra.mxu1 %v848_v16  ;;  %p956_p7 = pneg %p955_p0  ;;  %p961_p12 = scmp.lt.s32.totalorder %s959_s9, %s953_s7 }
  0x86   : > { %355 = vmatpush1.bf16.msra.mxu0 %v842_v8  ;;  %743 = vmatprep.subr.bf16.mxu1 %v849_v17 }
  0x87   : > { %p962_p13 = por %p961_p12, %p960_p6 }
  0x89   : > { %713 = vmatmul.mubr.msk.bf16.vlgmr.msra.gmra.mrb[0].mxu0 %vm344_vm0, %v283_v10  ;;  %744 = vmatpush3.bf16.msra.mxu1 %v850_v18  ;;  %p963_p1 = pnand %p962_p13, %p956_p7 }
  0x8a   : > { %745 = vmatprep.subr.bf16.mxu1 %v851_v19 }
  0x8d   : > { %746 = vmatpush3.bf16.msra.mxu1 %v852_v20 }
  0x8e   : > { %747 = vmatprep.subr.bf16.mxu1 %v853_v21 }
  0x91   : > { %748 = vmatpush3.bf16.msra.mxu1 %v854_v22 }
  0x92   : > { %749 = vmatprep.subr.bf16.mxu1 %v855_v23 }
  0x95   : > { %750 = vmatpush3.bf16.msra.mxu1 %v856_v24 }
  0x96   : > { %751 = vmatprep.subr.bf16.mxu1 %v857_v25 }
  0x99   : > { %752 = vmatpush3.bf16.msra.mxu1 %v858_v26 }
 0x15c   : > { %v382_v34 = vpop.f32.mrb[0].mxu0 }
 0x15d   : > { %v383_v35 = vadd.f32 %v382_v34, %v297_v32  ;;  %v384_v36 = vpop.f32.mrb[1].mxu0 }
 0x15e   : > { %v385_v37 = vadd.f32 %v384_v36, %v301_v33  ;;  %v386_v38 = vpop.f32.mrb[2].mxu0 }
 0x15f   : > { %v714_v39 = vmul.f32 -1.442695, %v383_v35  ;;  %v387_v40 = vpop.f32.mrb[3].mxu0 }
 0x160   : > { %v715_v41 = vmul.f32 -1.442695, %v385_v37 }
 0x161   : > { %859 = vpow2.f32 %v714_v39 }
 0x162   : > { %861 = vpow2.f32 %v715_v41 }
 0x16b   : > { %v860_v42 = vpop.eup %859 }
 0x16c   : > { %v862_v43 = vpop.eup %861  ;;  %v395_v44 = vadd.f32 1.0, %v860_v42 }
 0x16d   : > { %v396_v45 = vadd.f32 1.0, %v862_v43 }
 0x16e   : > { %863 = vrcp.f32 %v395_v44 }
 0x16f   : > { %865 = vrcp.f32 %v396_v45 }
 0x178   : > { %v864_v46 = vpop.eup %863 }
 0x179   : > { %v866_v47 = vpop.eup %865  ;;  %v401_v48 = vmul.f32 %v864_v46, %v383_v35 }
 0x17a   : > { %v402_v49 = vmul.f32 %v866_v47, %v385_v37 }
 0x17b   : > { %v403_v51 = vpack.c.bf16 %v401_v48, %v401_v48 }
 0x17c   : > { %v404_v50 = vpack.c.bf16 %v402_v49, %v402_v49 }
 0x17e   : > { %572 = vmatprep.mubr.bf16.mxu1 %v404_v50 }
 0x17f   : > { %573 = vmatmul.mubr.bf16.vlgmr.msra.gmra.mrb[0].mxu1 %v403_v51 }
 0x252   : > { %v753_v52 = vpop.f32.mrb[0].mxu1 }
 0x253   : > { %v754_v54 = vpop.f32.mrb[1].mxu1 }
 0x254   : > { %v755_v55 = vadd.f32 %v754_v54, %v753_v52  ;;  %v756_v56 = vpop.f32.mrb[2].mxu1 }
 0x255   : > { %v757_v57 = vpop.f32.mrb[3].mxu1 }
 0x256   : > { %v575_v58 = vadd.f32 %v755_v55, %v716_v53 }
 0x258   : > { %580 = vst [vmem:[%s277_s14] sm:$0xff] %v575_v58 }
 0x259   : > { %966 = shalt.err (!%p963_p1)
}
 0x25a   : > { %s967_s27 = scalar_lea.hbm %s1288_s15, 128  ;;  %s971_s13 = scalar_lea.hbm %s1337_s5, 256 }
 0x25b   : > { %p968_p11 = scmp.ne.s32.totalorder %s1288_s15, %s967_s27  ;;  %p972_p4 = scmp.lt.u32.totalorder %s1288_s15, %s1337_s5 }
 0x25c   : > { %p973_p9 = scmp.lt.u32.totalorder %s971_s13, %s967_s27  ;;  %p975_p10 = scmp.lt.u32.totalorder %s967_s27, %s1288_s15 }
 0x25d   : > { %p969_p3 = pnand %p968_p11, %p1361_p2 }
 0x25e   : > { %p974_p5 = por %p973_p9, %p972_p4 }
 0x25f   : > { %p970_p8 = pneg %p969_p3 }
 0x260   : > { %p976_p0 = por %p975_p10, %p974_p5 }
 0x262   : > { %p977_p7 = pnand %p976_p0, %p970_p8 }
 0x264   : > { %980 = shalt.err (!%p977_p7)
}
 0x265   : > { %769 = dma.vmem_to_hbm [thread:$0]  (%p1361_p2), %s1290_s23, 128, %s1288_s15, %s582_s11  }
 0x266 PF: > { %s607_s17 = sand.u32 1, %s1015_s18   ;;  %p1362_p6 = scmp.ne.s32.totalorder %s1348_s6, 0 }
 0x267   : > { %p1363_p12 = scmp.ge.s32.totalorder %s1027_s21, 2  ;;  %s608_s25 = scalar_lea.sflag [#allocation4], %s607_s17 }
 0x269   : > { %p783_p13 = pnand %p1363_p12, %p1362_p6 }
 0x26b   : > { %1010 = dma.done.wait (!%p783_p13), %s608_s25, 128  }
 0x26c   : > { %1012 = vsyncadd (!%p783_p13), %s608_s25, 4294967168  ;;  %s1364_s0 = sld [smem:[#allocation13_spill]]  ;;  %p17_p1 = scmp.ge.s32.totalorder %s1093_s24, 4  }
 0x26d   : > { %s1365_s18 = smov %s1019_s19  ;;  %s1366_s19 = smov %s1023_s20 }
 0x26e   : > { %s1368_s21 = smov %s1093_s24  ;;  %19 = sbr.rel (!%p17_p1) target bundleno = 7 (0x7), region = 95 }
 0x272   : > { %s1367_s20 = smov %s1364_s0 }
 0x275   :  { %613 = vsyncpa [#allocation3], 1 }
 0x276   :  { %615 = vsyncpa [#allocation3 + $0x1], 1 }
 0x277   :  { %616 = vsyncpa [#allocation6], 1 }
 0x278   :  { %617 = vsyncpa [#allocation4], 1 }
 0x279   :  { %619 = vsyncpa [#allocation4 + $0x1], 1 }

</bundles_post_ra>
